<compile_context>
chip_gen: v7x
topology: tpu7x:2x2x1
jax: 0.10.0
libtpu: 0.0.40
codegen_flags: <defaults>
</compile_context>

<pallas_src>
import functools

import jax
import jax.numpy as jnp
from jax.experimental import pallas as pl
from jax.experimental.pallas import tpu as pltpu


def _inverse_realnvp_kernel(z_ref, h_ref, w1z_ref, w1h_ref, b1_ref,
                            w2t_ref, b2t_ref, w2s_ref, b2s_ref,
                            zo_ref, ld_ref, *, cbs, approx_recip):
    """One batch tile of the inverse conditional RealNVP transform.

    z_ref:   (TB, D)    z_new tile (streamed)
    h_ref:   (TB, H)    conditioning tile (streamed)
    w1z_ref: (D, HID)   first MLP weight; rows [cbs:D] are zero (no z slice)
    w1h_ref: (H, HID)   first MLP weight, h rows
    b1_ref:  (1, HID)
    w2t_ref: (HID, D)   second MLP weight -> t, lane-shifted into [cbs:D]
    b2t_ref: (1, D)
    w2s_ref: (HID, D)   second MLP weight -> s, lane-shifted into [cbs:D]
    b2s_ref: (1, D)
    zo_ref:  (TB, D)    full-width output tile: [z_keep | z_change]
    ld_ref:  (TB, 1)    log-det-jacobian output tile
    """
    z_in = z_ref[...]                              # native (f32 or bf16) for MXU
    h_in = h_ref[...]
    z_f32 = z_in.astype(jnp.float32)               # f32 epilogue math

    # Layer 1: relu([z_keep | h] @ W1 + b1) as two accumulating MXU dots.
    # W1's z-part is zero-padded to D rows in the wrapper, so the streamed z
    # tile is consumed whole (no non-aligned lane slice / relayout per step).
    hid = (jnp.dot(z_in, w1z_ref[...], preferred_element_type=jnp.float32)
           + jnp.dot(h_in, w1h_ref[...], preferred_element_type=jnp.float32)
           + b1_ref[...].astype(jnp.float32))
    hid = jnp.maximum(hid, 0.0)
    hid = hid.astype(w2t_ref.dtype)                # bf16 when weights are bf16

    # Layer 2: t and s are produced directly in the z_rest lane positions
    # [cbs:D] via the lane-shifted W2/b2 prepared in the wrapper -> no post-dot
    # slicing, both dots are lane-dense.
    t_full = (jnp.dot(hid, w2t_ref[...], preferred_element_type=jnp.float32)
              + b2t_ref[...].astype(jnp.float32))
    s_full = (jnp.dot(hid, w2s_ref[...], preferred_element_type=jnp.float32)
              + b2s_ref[...].astype(jnp.float32))

    # softplus(s) computed once; reused for the affine inverse and the log-det.
    # Lanes [:cbs] hold s = 0 (zero weight columns) -> finite dummy values that
    # are masked out below; no inf/nan risk from the padding lanes.
    sp = jnp.logaddexp(s_full, 0.0)                        # stable softplus
    inv_sp = pl.reciprocal(sp, approx=approx_recip)        # EUP slot
    z_change = (z_f32 - t_full) * inv_sp

    lane = jax.lax.broadcasted_iota(jnp.int32, z_change.shape, 1)
    keep = lane < cbs
    # Full-width, lane-dense output: passthrough lanes come straight from the
    # already-VMEM-resident z tile (nearly free), change lanes from z_change.
    zo_ref[...] = jnp.where(keep, z_f32, z_change).astype(zo_ref.dtype)
    ld_ref[...] = -jnp.sum(jnp.where(keep, 0.0, jnp.log(sp)),
                           axis=-1, keepdims=True)


def inverse_conditional_realnvp_forward(z_new, h, params,
                                        constant_block_size=None,
                                        batch_tile=None,
                                        cast_to_bf16=False,
                                        approx_reciprocal=False,
                                        alias_z_into_output=False,
                                        stream_buffering=None):
    """Wrapper: batch-tiled pallas_call. Returns (z_old, log_det_jacobian).

    cast_to_bf16:        stream z/h and hold weights in bf16 (bf16 MXU path,
                         halves HBM/VMEM bytes).  NOTE: this also rounds the
                         z_keep passthrough and z_rest to bf16 -> looser
                         tolerance than the f32 default.
    alias_z_into_output: add input_output_aliases={0: 0} so the z_new HBM
                         buffer is reused for the output (caller must donate
                         z_new for the alias to take effect without a copy).
    stream_buffering:    optional int N -> pipeline_mode=pl.Buffered(N) on the
                         two streamed inputs (useful when the batch tile is
                         small and per-step DMA latency is exposed).
    """
    B, D = z_new.shape
    Hdim = h.shape[-1]
    cbs = (D // 2 + D % 2) if constant_block_size is None else constant_block_size
    change = D - cbs
    if cbs <= 0 or change <= 0:
        raise ValueError(f"Degenerate split: cbs={cbs}, change={change}")

    w1, b1, w2, b2 = params
    HID = w1.shape[-1]

    w_dtype = jnp.bfloat16 if cast_to_bf16 else w1.dtype
    sub = 16 if cast_to_bf16 else 8                # sublane packing granularity

    # ---- weight preparation (constant-folded under jit for static params) ----
    # W1 z-part zero-padded to D rows: rows [cbs:D] contribute nothing, so the
    # kernel can feed the whole streamed z tile to the MXU without slicing.
    w1z = jnp.zeros((D, HID), w_dtype).at[:cbs, :].set(w1[:cbs, :].astype(w_dtype))
    w1h = w1[cbs:, :].astype(w_dtype)
    b1r = b1.reshape(1, HID).astype(jnp.float32)
    # W2/b2 split into t/s halves AND lane-shifted so the t/s results land in
    # lanes [cbs:D], i.e. exactly where z_rest lives in the streamed z tile.
    b2f = b2.reshape(1, -1).astype(jnp.float32)
    w2t = jnp.zeros((HID, D), w_dtype).at[:, cbs:].set(w2[:, :change].astype(w_dtype))
    w2s = jnp.zeros((HID, D), w_dtype).at[:, cbs:].set(w2[:, change:].astype(w_dtype))
    b2t = jnp.zeros((1, D), jnp.float32).at[:, cbs:].set(b2f[:, :change])
    b2s = jnp.zeros((1, D), jnp.float32).at[:, cbs:].set(b2f[:, change:])

    # ---- batch tile: several pipelined grid steps, capped for v5e VMEM ----
    if batch_tile is None:
        if B <= 2 * sub:
            TB = B
        else:
            target_steps = 8                       # >= 2 TCs x 4 steps on v7x
            TB = -(-B // target_steps)
            TB = -(-TB // sub) * sub               # round up to sublane multiple
            TB = min(TB, 512)                      # v5e 16 MiB scoped-VMEM safe
    else:
        TB = batch_tile
    if TB != B and TB % sub != 0:
        raise ValueError(f"batch_tile must be a multiple of {sub} "
                         f"({'bf16' if cast_to_bf16 else 'f32'} sublane tiling)")
    nb = pl.cdiv(B, TB)

    if cast_to_bf16:
        z_in, h_in = z_new.astype(jnp.bfloat16), h.astype(jnp.bfloat16)
    else:
        z_in, h_in = z_new, h

    # ---- explicit VMEM budget (valid on v5e 16 MiB default / v7x 64 MiB) ----
    isz = jnp.dtype(z_in.dtype).itemsize
    osz = jnp.dtype(z_new.dtype).itemsize
    wsz = jnp.dtype(w_dtype).itemsize
    stream_bytes = (max(stream_buffering or 2, 2)
                    * (TB * D * isz + TB * Hdim * isz)
                    + 2 * (TB * D * osz + TB * 4))
    weight_bytes = 2 * ((D * HID + Hdim * HID + 2 * HID * D) * wsz
                        + (HID + 2 * D) * 4)
    vmem_limit = int(min(max(2 * (stream_bytes + weight_bytes) + (4 << 20),
                             32 << 20), 64 << 20))

    # ---- cost estimate so XLA schedules surrounding flow layers sensibly ----
    cost = pl.CostEstimate(
        flops=int(2 * B * (D * HID + Hdim * HID + 2 * HID * D)),
        transcendentals=int(4 * B * D),            # exp+log1p, log, rcp per lane
        bytes_accessed=int(B * D * isz + B * Hdim * isz + weight_bytes // 2
                           + B * D * osz + B * 4))

    def _stream(shape):
        if stream_buffering is None:
            return pl.BlockSpec(shape, lambda i: (i, 0))
        return pl.BlockSpec(shape, lambda i: (i, 0),
                            pipeline_mode=pl.Buffered(int(stream_buffering)))

    def _const(shape):
        return pl.BlockSpec(shape, lambda i: (0, 0))

    io_alias = {}
    if alias_z_into_output and z_in.dtype == z_new.dtype:
        io_alias = {0: 0}                          # reuse z_new HBM buffer

    kernel = functools.partial(_inverse_realnvp_kernel, cbs=cbs,
                               approx_recip=approx_reciprocal)

    z_out, log_det = pl.pallas_call(
        kernel,
        out_shape=(
            jax.ShapeDtypeStruct((B, D), z_new.dtype),
            jax.ShapeDtypeStruct((B, 1), jnp.float32),
        ),
        grid=(nb,),
        in_specs=[
            _stream((TB, D)),                      # z_new tile stream
            _stream((TB, Hdim)),                   # h tile stream
            _const(w1z.shape),                     # resident weights / biases
            _const(w1h.shape),
            _const(b1r.shape),
            _const(w2t.shape),
            _const(b2t.shape),
            _const(w2s.shape),
            _const(b2s.shape),
        ],
        out_specs=(
            pl.BlockSpec((TB, D), lambda i: (i, 0)),
            pl.BlockSpec((TB, 1), lambda i: (i, 0)),
        ),
        input_output_aliases=io_alias,
        cost_estimate=cost,
        compiler_params=pltpu.CompilerParams(
            dimension_semantics=("parallel",),
            vmem_limit_bytes=vmem_limit),
    )(z_in, h_in, w1z, w1h, b1r, w2t, b2t, w2s, b2s)

    return z_out, jnp.squeeze(log_det, axis=-1)


def _reference_forward(z_new, h, params, constant_block_size=None):
    """Pure-JAX reference mirroring the PyTorch module's forward()."""
    _, D = z_new.shape
    cbs = (D // 2 + D % 2) if constant_block_size is None else constant_block_size
    w1, b1, w2, b2 = params
    z_keep, z_rest = z_new[:, :cbs], z_new[:, cbs:]
    x = jnp.concatenate([z_keep, h], axis=-1)
    hid = jnp.maximum(x @ w1 + b1, 0.0)
    ts = hid @ w2 + b2
    change = D - cbs
    t, s = ts[:, :change], ts[:, change:]
    sp = jax.nn.softplus(s)
    z_change = (z_rest - t) / sp
    log_det = -jnp.sum(jnp.log(sp), axis=-1)
    return jnp.concatenate([z_keep, z_change], axis=-1), log_det


if __name__ == "__main__":
    # Small shapes: batch=64 (default tiling -> 8 grid steps of 8 rows, which
    # exercises the pipelined grid), z dim=8 (-> z_keep 4 / z_change 4),
    # cond dim=32, MLP hidden=32.
    B, D, H, HID = 64, 8, 32, 32
    cbs = D // 2 + D % 2
    change = D - cbs

    key = jax.random.PRNGKey(0)
    k_z, k_h, k_w1, k_b1, k_w2, k_b2 = jax.random.split(key, 6)

    z_new = jax.random.normal(k_z, (B, D), dtype=jnp.float32)
    h = jax.random.normal(k_h, (B, H), dtype=jnp.float32)

    # Deterministic synthetic parameters for t_and_s_net.
    w1 = 0.1 * jax.random.normal(k_w1, (cbs + H, HID), dtype=jnp.float32)
    b1 = 0.1 * jax.random.normal(k_b1, (1, HID), dtype=jnp.float32)
    w2 = 0.1 * jax.random.normal(k_w2, (HID, 2 * change), dtype=jnp.float32)
    b2 = 0.1 * jax.random.normal(k_b2, (1, 2 * change), dtype=jnp.float32)
    params = (w1, b1, w2, b2)

    run = jax.jit(lambda z, c: inverse_conditional_realnvp_forward(z, c, params))
    z_out, log_det = run(z_new, h)
    jax.block_until_ready((z_out, log_det))

    z_ref, ld_ref = _reference_forward(z_new, h, params)
    assert z_out.shape == (B, D) and log_det.shape == (B,)
    assert jnp.allclose(z_out, z_ref, atol=1e-5, rtol=1e-5)
    assert jnp.allclose(log_det, ld_ref, atol=1e-5, rtol=1e-5)

    print("KERNEL_OK")
</pallas_src>

<mosaic_0001>
module attributes {stable_mosaic.version = 11 : i64} {
  func.func @_inverse_realnvp_kernel(%arg0: i32, %arg1: memref<8x8xf32, #tpu.memory_space<vmem>>, %arg2: memref<8x32xf32, #tpu.memory_space<vmem>>, %arg3: memref<8x32xf32, #tpu.memory_space<vmem>>, %arg4: memref<32x32xf32, #tpu.memory_space<vmem>>, %arg5: memref<1x32xf32, #tpu.memory_space<vmem>>, %arg6: memref<32x8xf32, #tpu.memory_space<vmem>>, %arg7: memref<1x8xf32, #tpu.memory_space<vmem>>, %arg8: memref<32x8xf32, #tpu.memory_space<vmem>>, %arg9: memref<1x8xf32, #tpu.memory_space<vmem>>, %arg10: memref<8x8xf32, #tpu.memory_space<vmem>>, %arg11: memref<8x1xf32, #tpu.memory_space<vmem>>) attributes {dimension_semantics = [#tpu.dimension_semantics<parallel>], iteration_bounds = array<i64: 8>, scalar_prefetch = 0 : i64, scratch_operands = 0 : i64, tpu.core_type = #tpu.core_type<tc>, window_params = [{transform_indices = @transform_0, window_bounds = array<i64: 8, 8>}, {transform_indices = @transform_1, window_bounds = array<i64: 8, 32>}, {pipeline_mode = #tpu.pipeline_mode<synchronous>, transform_indices = @transform_2, window_bounds = array<i64: 8, 32>}, {pipeline_mode = #tpu.pipeline_mode<synchronous>, transform_indices = @transform_3, window_bounds = array<i64: 32, 32>}, {pipeline_mode = #tpu.pipeline_mode<synchronous>, transform_indices = @transform_4, window_bounds = array<i64: 1, 32>}, {pipeline_mode = #tpu.pipeline_mode<synchronous>, transform_indices = @transform_5, window_bounds = array<i64: 32, 8>}, {pipeline_mode = #tpu.pipeline_mode<synchronous>, transform_indices = @transform_6, window_bounds = array<i64: 1, 8>}, {pipeline_mode = #tpu.pipeline_mode<synchronous>, transform_indices = @transform_7, window_bounds = array<i64: 32, 8>}, {pipeline_mode = #tpu.pipeline_mode<synchronous>, transform_indices = @transform_8, window_bounds = array<i64: 1, 8>}, {transform_indices = @transform_9, window_bounds = array<i64: 8, 8>}, {transform_indices = @transform_10, window_bounds = array<i64: 8, 1>}]} {
    %c0 = arith.constant 0 : index
    %c0_0 = arith.constant 0 : index
    %0 = vector.load %arg1[%c0, %c0_0] : memref<8x8xf32, #tpu.memory_space<vmem>>, vector<8x8xf32>
    %c0_1 = arith.constant 0 : index
    %c0_2 = arith.constant 0 : index
    %1 = vector.load %arg2[%c0_1, %c0_2] : memref<8x32xf32, #tpu.memory_space<vmem>>, vector<8x32xf32>
    %c0_3 = arith.constant 0 : index
    %c0_4 = arith.constant 0 : index
    %2 = vector.load %arg3[%c0_3, %c0_4] : memref<8x32xf32, #tpu.memory_space<vmem>>, vector<8x32xf32>
    %cst = arith.constant dense<0.000000e+00> : vector<8x32xf32>
    %3 = tpu.matmul %0, %2, %cst {dimension_numbers = #tpu.dot_dimension_numbers<[1], [0], [0], [1], [0, 0, 1, 1], [], []>} : vector<8x8xf32>, vector<8x32xf32>, vector<8x32xf32> -> vector<8x32xf32>
    %c0_5 = arith.constant 0 : index
    %c0_6 = arith.constant 0 : index
    %4 = vector.load %arg4[%c0_5, %c0_6] : memref<32x32xf32, #tpu.memory_space<vmem>>, vector<32x32xf32>
    %cst_7 = arith.constant dense<0.000000e+00> : vector<8x32xf32>
    %5 = tpu.matmul %1, %4, %cst_7 {dimension_numbers = #tpu.dot_dimension_numbers<[1], [0], [0], [1], [0, 0, 1, 1], [], []>} : vector<8x32xf32>, vector<32x32xf32>, vector<8x32xf32> -> vector<8x32xf32>
    %6 = arith.addf %3, %5 : vector<8x32xf32>
    %c0_8 = arith.constant 0 : index
    %c0_9 = arith.constant 0 : index
    %7 = vector.load %arg5[%c0_8, %c0_9] : memref<1x32xf32, #tpu.memory_space<vmem>>, vector<1x32xf32>
    %8 = vector.broadcast %7 : vector<1x32xf32> to vector<8x32xf32>
    %9 = arith.addf %6, %8 : vector<8x32xf32>
    %cst_10 = arith.constant 0.000000e+00 : f32
    %10 = vector.broadcast %cst_10 : f32 to vector<8x32xf32>
    %11 = arith.maximumf %9, %10 : vector<8x32xf32>
    %c0_11 = arith.constant 0 : index
    %c0_12 = arith.constant 0 : index
    %12 = vector.load %arg6[%c0_11, %c0_12] : memref<32x8xf32, #tpu.memory_space<vmem>>, vector<32x8xf32>
    %cst_13 = arith.constant dense<0.000000e+00> : vector<8x8xf32>
    %13 = tpu.matmul %11, %12, %cst_13 {dimension_numbers = #tpu.dot_dimension_numbers<[1], [0], [0], [1], [0, 0, 1, 1], [], []>} : vector<8x32xf32>, vector<32x8xf32>, vector<8x8xf32> -> vector<8x8xf32>
    %c0_14 = arith.constant 0 : index
    %c0_15 = arith.constant 0 : index
    %14 = vector.load %arg7[%c0_14, %c0_15] : memref<1x8xf32, #tpu.memory_space<vmem>>, vector<1x8xf32>
    %15 = vector.broadcast %14 : vector<1x8xf32> to vector<8x8xf32>
    %16 = arith.addf %13, %15 : vector<8x8xf32>
    %c0_16 = arith.constant 0 : index
    %c0_17 = arith.constant 0 : index
    %17 = vector.load %arg8[%c0_16, %c0_17] : memref<32x8xf32, #tpu.memory_space<vmem>>, vector<32x8xf32>
    %cst_18 = arith.constant dense<0.000000e+00> : vector<8x8xf32>
    %18 = tpu.matmul %11, %17, %cst_18 {dimension_numbers = #tpu.dot_dimension_numbers<[1], [0], [0], [1], [0, 0, 1, 1], [], []>} : vector<8x32xf32>, vector<32x8xf32>, vector<8x8xf32> -> vector<8x8xf32>
    %c0_19 = arith.constant 0 : index
    %c0_20 = arith.constant 0 : index
    %19 = vector.load %arg9[%c0_19, %c0_20] : memref<1x8xf32, #tpu.memory_space<vmem>>, vector<1x8xf32>
    %20 = vector.broadcast %19 : vector<1x8xf32> to vector<8x8xf32>
    %21 = arith.addf %18, %20 : vector<8x8xf32>
    %cst_21 = arith.constant 0.000000e+00 : f32
    %22 = vector.broadcast %cst_21 : f32 to vector<8x8xf32>
    %23 = arith.maximumf %21, %22 : vector<8x8xf32>
    %24 = vector.broadcast %cst_21 : f32 to vector<8x8xf32>
    %25 = arith.subf %21, %24 : vector<8x8xf32>
    %26 = arith.cmpf one, %25, %25 : vector<8x8xf32>
    %27 = vector.broadcast %cst_21 : f32 to vector<8x8xf32>
    %28 = arith.addf %21, %27 : vector<8x8xf32>
    %29 = math.absf %25 : vector<8x8xf32>
    %cst_22 = arith.constant 0.000000e+00 : f32
    %30 = vector.broadcast %cst_22 : f32 to vector<8x8xf32>
    %31 = arith.subf %30, %29 : vector<8x8xf32>
    %32 = math.exp %31 : vector<8x8xf32>
    %33 = math.log1p %32 : vector<8x8xf32>
    %34 = arith.addf %23, %33 : vector<8x8xf32>
    %35 = arith.select %26, %28, %34 : vector<8x8xi1>, vector<8x8xf32>
    %36 = tpu.reciprocal %35 : vector<8x8xf32> -> vector<8x8xf32>
    %37 = arith.subf %0, %16 : vector<8x8xf32>
    %38 = arith.mulf %37, %36 : vector<8x8xf32>
    %39 = tpu.iota {dimensions = array<i32: 1>} : vector<8x8xi32>
    %c4_i32 = arith.constant 4 : i32
    %40 = vector.broadcast %c4_i32 : i32 to vector<8x8xi32>
    %41 = arith.cmpi slt, %39, %40 : vector<8x8xi32>
    %42 = arith.select %41, %0, %38 : vector<8x8xi1>, vector<8x8xf32>
    %c0_23 = arith.constant 0 : index
    %c0_24 = arith.constant 0 : index
    %43 = vector.load %arg10[%c0_23, %c0_24] : memref<8x8xf32, #tpu.memory_space<vmem>>, vector<8x8xf32>
    tpu.vector_store %arg10[%c0_23, %c0_24], %42 {strides = array<i32>} : memref<8x8xf32, #tpu.memory_space<vmem>>, vector<8x8xf32>,
    %44 = math.log %35 : vector<8x8xf32>
    %cst_25 = arith.constant 0.000000e+00 : f32
    %45 = vector.broadcast %cst_25 : f32 to vector<8x8xf32>
    %46 = arith.select %41, %45, %44 : vector<8x8xi1>, vector<8x8xf32>
    %cst_26 = arith.constant dense<0.000000e+00> : vector<8xf32>
    %47 = vector.multi_reduction <add>, %46, %cst_26 [1] : vector<8x8xf32> to vector<8xf32>
    %48 = vector.shape_cast %47 : vector<8xf32> to vector<8x1xf32>
    %cst_27 = arith.constant 0.000000e+00 : f32
    %49 = vector.broadcast %cst_27 : f32 to vector<8x1xf32>
    %50 = arith.subf %49, %48 : vector<8x1xf32>
    %c0_28 = arith.constant 0 : index
    %c0_29 = arith.constant 0 : index
    %51 = vector.load %arg11[%c0_28, %c0_29] : memref<8x1xf32, #tpu.memory_space<vmem>>, vector<8x1xf32>
    tpu.vector_store %arg11[%c0_28, %c0_29], %50 {strides = array<i32>} : memref<8x1xf32, #tpu.memory_space<vmem>>, vector<8x1xf32>,
    return
  }
  func.func @transform_0(%arg0: i32) -> (i32, i32) {
    %c0_i32 = arith.constant 0 : i32
    %c0_i32_0 = arith.constant 0 : i32
    return %arg0, %c0_i32 : i32, i32
  }
  func.func @transform_1(%arg0: i32) -> (i32, i32) {
    %c0_i32 = arith.constant 0 : i32
    %c0_i32_0 = arith.constant 0 : i32
    return %arg0, %c0_i32 : i32, i32
  }
  func.func @transform_2(%arg0: i32) -> (i32, i32) {
    %c0_i32 = arith.constant 0 : i32
    %c0_i32_0 = arith.constant 0 : i32
    %c0_i32_1 = arith.constant 0 : i32
    return %c0_i32, %c0_i32_0 : i32, i32
  }
  func.func @transform_3(%arg0: i32) -> (i32, i32) {
    %c0_i32 = arith.constant 0 : i32
    %c0_i32_0 = arith.constant 0 : i32
    %c0_i32_1 = arith.constant 0 : i32
    return %c0_i32, %c0_i32_0 : i32, i32
  }
  func.func @transform_4(%arg0: i32) -> (i32, i32) {
    %c0_i32 = arith.constant 0 : i32
    %c0_i32_0 = arith.constant 0 : i32
    %c0_i32_1 = arith.constant 0 : i32
    return %c0_i32, %c0_i32_0 : i32, i32
  }
  func.func @transform_5(%arg0: i32) -> (i32, i32) {
    %c0_i32 = arith.constant 0 : i32
    %c0_i32_0 = arith.constant 0 : i32
    %c0_i32_1 = arith.constant 0 : i32
    return %c0_i32, %c0_i32_0 : i32, i32
  }
  func.func @transform_6(%arg0: i32) -> (i32, i32) {
    %c0_i32 = arith.constant 0 : i32
    %c0_i32_0 = arith.constant 0 : i32
    %c0_i32_1 = arith.constant 0 : i32
    return %c0_i32, %c0_i32_0 : i32, i32
  }
  func.func @transform_7(%arg0: i32) -> (i32, i32) {
    %c0_i32 = arith.constant 0 : i32
    %c0_i32_0 = arith.constant 0 : i32
    %c0_i32_1 = arith.constant 0 : i32
    return %c0_i32, %c0_i32_0 : i32, i32
  }
  func.func @transform_8(%arg0: i32) -> (i32, i32) {
    %c0_i32 = arith.constant 0 : i32
    %c0_i32_0 = arith.constant 0 : i32
    %c0_i32_1 = arith.constant 0 : i32
    return %c0_i32, %c0_i32_0 : i32, i32
  }
  func.func @transform_9(%arg0: i32) -> (i32, i32) {
    %c0_i32 = arith.constant 0 : i32
    %c0_i32_0 = arith.constant 0 : i32
    return %arg0, %c0_i32 : i32, i32
  }
  func.func @transform_10(%arg0: i32) -> (i32, i32) {
    %c0_i32 = arith.constant 0 : i32
    %c0_i32_0 = arith.constant 0 : i32
    return %arg0, %c0_i32 : i32, i32
  }
}

</mosaic_0001>

<bundles_post_ra>
// kernel: _lambda_.1
= control target key start
LH: loop header
LB: loop body
LE: loop exit
PB: predicated region body
PF: predicated region fallthrough
CT: control target
= control target key end

     0   :  { %s1019_s13 = smov 0   ;;  %s1111_s0 = inlined_call_operand.vmem [shape: f32[64,8], index: 0, kind: input, shape index: {}]   ;;  %s1112_s1 = inlined_call_operand.vmem [shape: f32[64,32], index: 1, kind: input, shape index: {}]   ;;  %s1113_s2 = inlined_call_operand.vmem [shape: f32[8,32], index: 2, kind: input, shape index: {}]   ;;  %s1114_s3 = inlined_call_operand.vmem [shape: f32[32,32], index: 3, kind: input, shape index: {}]   ;;  %s1115_s4 = inlined_call_operand.vmem [shape: f32[1,32], index: 4, kind: input, shape index: {}]   ;;  %s1116_s5 = inlined_call_operand.vmem [shape: f32[32,8], index: 5, kind: input, shape index: {}]   ;;  %s1117_s6 = inlined_call_operand.vmem [shape: f32[1,8], index: 6, kind: input, shape index: {}]   ;;  %s1118_s7 = inlined_call_operand.vmem [shape: f32[32,8], index: 7, kind: input, shape index: {}]   ;;  %s1119_s8 = inlined_call_operand.vmem [shape: f32[1,8], index: 8, kind: input, shape index: {}]   ;;  %s1120_s9 = inlined_call_operand.vmem [shape: f32[64,8], index: 9, kind: output, shape index: {0}]   ;;  %s1121_s10 = inlined_call_operand.vmem [shape: f32[64,1], index: 10, kind: output, shape index: {1}]  }
   0x1 LB: > { %s843_s14 = sadd.s32 4294967295, %s959_s13   ;;  %p847_p0 = scmp.ge.s32.totalorder %s959_s13, 1  ;;  %s959_s13 = sphi %s1019_s13, %s21_s13  }
   0x2   : > { %p323_p1 = scmp.lt.s32.totalorder %s959_s13, 9 }
   0x4   : > { %p324_p2 = pnand %p847_p0, %p323_p1 }
   0x5   : > { %v386_v0 = vld [vmem:[%s1114_s3] sm:$0xff] (!%p324_p2)  ;;  %v387_v1 = vld [vmem:[%s1114_s3 + $0x8] sm:$0xff] (!%p324_p2)  ;;  %v388_v2 = vld [vmem:[%s1114_s3 + $0x10] sm:$0xff] (!%p324_p2)  ;;  %v961_v3 = vmov (!%p324_p2), 0.0|0.0   ;;  %v962_v6 = vmov (!%p324_p2), 0.0   ;;  %p367_p3 = scmp.lt.s32.totalorder (!%p324_p2), %s843_s14, 7  ;;  %v733_v53 = vlaneseq (!%p324_p2) }
   0x6   : > { %327 = sbr.rel (%p324_p2) target bundleno = 647 (0x287), region = 56  ;;  %916 = vmatprep.subr.bf16.mxu0 (!%p324_p2), %v961_v3  ;;  %v917_v4 = vpack.c.bf16 (!%p324_p2), %v387_v1, %v386_v0  ;;  %v389_v5 = vld [vmem:[%s1114_s3 + $0x18] sm:$0xff] (!%p324_p2)  ;;  %889 = vmatprep.subr.mxu1 (!%p324_p2), %v962_v6  ;;  %v385_v7 = vld [vmem:[%s1113_s2] sm:$0xff] (!%p324_p2)  ;;  %vm963_vm0 = vmmov (!%p324_p2), 0   ;;  %vm464_vm1 = vcmask (!%p324_p2), 64512   ;;  %vm390_vm2 = vcmask (!%p324_p2), 261120  }
   0x7   : > { %890 = vmatpush3.msra.mxu1 (!%p324_p2), %v385_v7  ;;  %891 = vmatprep.mubr.msk.f32.mxu1 (!%p324_p2), %vm963_vm0, %v962_v6  ;;  %v920_v8 = vpack.c.bf16 (!%p324_p2), %v389_v5, %v388_v2  ;;  %v547_v11 = vld [vmem:[%s1116_s5] sm:$0xff] (!%p324_p2)  ;;  %v548_v12 = vld [vmem:[%s1116_s5 + $0x8] sm:$0xff] (!%p324_p2)  ;;  %v549_v17 = vld [vmem:[%s1116_s5 + $0x10] sm:$0xff] (!%p324_p2)  ;;  %v734_v55 = vand.u32 (!%p324_p2), 127, %v733_v53  ;;  %vm745_vm6 = vcmask (!%p324_p2), 7168  }
   0x8   : > { %918 = vmatpush3.bf16.msra.mxu0 (!%p324_p2), %v917_v4  ;;  %886 = vmatprep.mubr.msk.f32.mxu0 (!%p324_p2), %vm963_vm0, %v962_v6  ;;  %v631_v13 = vld [vmem:[%s1118_s7] sm:$0xff] (!%p324_p2)  ;;  %v923_v14 = vpack.c.bf16 (!%p324_p2), %v548_v12, %v547_v11  ;;  %v632_v15 = vld [vmem:[%s1118_s7 + $0x8] sm:$0xff] (!%p324_p2)  ;;  %v550_v18 = vld [vmem:[%s1116_s5 + $0x18] sm:$0xff] (!%p324_p2) }
   0x9   : > { %919 = vmatprep.subr.bf16.mxu0 (!%p324_p2), %v961_v3  ;;  %922 = vmatprep.subr.bf16.mxu1 (!%p324_p2), %v961_v3  ;;  %v929_v16 = vpack.c.bf16 (!%p324_p2), %v632_v15, %v631_v13  ;;  %v926_v19 = vpack.c.bf16 (!%p324_p2), %v550_v18, %v549_v17  ;;  %v633_v20 = vld [vmem:[%s1118_s7 + $0x10] sm:$0xff] (!%p324_p2)  ;;  %v634_v21 = vld [vmem:[%s1118_s7 + $0x18] sm:$0xff] (!%p324_p2)  ;;  %v854_v26 = vld [vmem:[%s1115_s4] ss:$0 sm:$0xff] (!%p324_p2)  ;;  %vm735_vm5 = vcmp.lt.s32.totalorder (!%p324_p2), %v734_v55, 4 }
   0xa   : > { %v932_v22 = vpack.c.bf16 (!%p324_p2), %v634_v21, %v633_v20  ;;  %v857_v31 = vld [vmem:[%s1119_s8] ss:$0 sm:$0xff] (!%p324_p2) }
   0xb   : > { %v855_v52 = vld [vmem:[%s1117_s6] ss:$0 sm:$0xff] (!%p324_p2) }
   0xc   : > { %921 = vmatpush3.bf16.msra.mxu0 (!%p324_p2), %v920_v8 }
   0xd   : > { %s1123_s14 = smov (!%p367_p3, %s843_s14), 7  ;;  %928 = vmatprep.subr.bf16.mxu0 %v961_v3 }
   0xe   : > { %s1044_s25 = sshll.u32 %s1123_s14, 3 }
   0xf   : > { %s370_s28 = scalar_lea.vmem %s1111_s0, %s1044_s25  ;;  %s374_s11 = scalar_lea.vmem %s1112_s1, %s1044_s25 }
  0x10   : > { %v1054_v9 = vld [vmem:[%s370_s28] sm:$0xff]  ;;  %s378_s19 = scalar_lea.vmem %s1120_s9, %s1044_s25  ;;  %s382_s22 = scalar_lea.vmem %s1121_s10, %s1044_s25 }
  0x11   : > { %v384_v10 = vld [vmem:[%s374_s11] sm:$0xff]  ;;  %892 = vmatmul.mubr.msk.f32.vlgmr.msra.gmra.mrb[0].mxu1 %vm464_vm1, %v1054_v9 }
  0x12   : > { %902 = vmatprep.mubr.msk.f32.mxu1 %vm963_vm0, %v962_v6  ;;  %887 = vmatmul.mubr.msk.f32.vlgmr.msra.gmra.mrb[0].mxu0 %vm390_vm2, %v384_v10 }
  0x13   : > { %913 = vmatprep.mubr.msk.f32.mxu0 %vm963_vm0, %v962_v6  ;;  %924 = vmatpush3.bf16.msra.mxu1 %v923_v14 }
  0x14   : > { %930 = vmatpush3.bf16.msra.mxu0 %v929_v16  ;;  %925 = vmatprep.subr.bf16.mxu1 %v961_v3 }
  0x15   : > { %931 = vmatprep.subr.bf16.mxu0 %v961_v3 }
  0x17   : > { %927 = vmatpush3.bf16.msra.mxu1 %v926_v19 }
  0x18   : > { %933 = vmatpush3.bf16.msra.mxu0 %v932_v22 }
  0xe4   : > { %v534_v23 = vpop.f32.mrb[0].mxu1 }
  0xe5   : > { %v893_v24 = vpop.f32.mrb[1].mxu1  ;;  %v460_v25 = vpop.f32.mrb[0].mxu0 }
  0xe6   : > { %v535_v27 = vadd.f32 %v534_v23, %v460_v25  ;;  %v888_v28 = vpop.f32.mrb[1].mxu0 }
  0xe8   : > { %v545_v29 = vadd.f32 %v854_v26, %v535_v27 }
  0xea   : > { %v546_v30 = vmax.f32 %v545_v29, 0.0 }
  0xec   : > { %903 = vmatmul.mubr.msk.f32.vlgmr.msra.gmra.mrb[2].mxu1 %vm390_vm2, %v546_v30  ;;  %914 = vmatmul.mubr.msk.f32.vlgmr.msra.gmra.mrb[2].mxu0 %vm390_vm2, %v546_v30 }
 0x1bf   : > { %v627_v32 = vpop.f32.mrb[2].mxu1  ;;  %v708_v33 = vpop.f32.mrb[2].mxu0 }
 0x1c0   : > { %v709_v34 = vadd.f32 %v857_v31, %v708_v33  ;;  %v904_v35 = vpop.f32.mrb[3].mxu1  ;;  %v915_v36 = vpop.f32.mrb[3].mxu0  ;;  %v628_v54 = vadd.f32 %v855_v52, %v627_v32 }
 0x1c2   : > { %v715_v37 = vand.u32 2147483647, %v709_v34  ;;  %v712_v48 = vmax.f32 %v709_v34, 0.0  ;;  %vm713_vm4 = vcmp.ne.f32.partialorder %v709_v34, %v709_v34  ;;  %v731_v56 = vsub.f32 %v1054_v9, %v628_v54 }
 0x1c4   : > { %v716_v38 = vsub.f32 0.0, %v715_v37 }
 0x1c6   : > { %v717_v39 = vmul.f32 1.442695, %v716_v38 }
 0x1c8   : > { %945 = vpow2.f32 %v717_v39 }
 0x1d2   : > { %v946_v40 = vpop.eup %945 }
 0x1d3   : > { %v719_v41 = vadd.f32 1.0, %v946_v40  ;;  %v722_v42 = vmul.f32 -0.5, %v946_v40  ;;  %v725_v44 = vand.u32 2147483647, %v946_v40 }
 0x1d5   : > { %947 = vlog2.f32 %v719_v41  ;;  %v723_v43 = vadd.f32 1.0, %v722_v42  ;;  %vm726_vm3 = vcmp.lt.f32.partialorder %v725_v44, 0.0004427343 }
 0x1d7   : > { %v724_v47 = vmul.f32 %v946_v40, %v723_v43 }
 0x1df   : > { %v948_v45 = vpop.eup %947 }
 0x1e0   : > { %v721_v46 = vmul.f32 0.6931472, %v948_v45 }
 0x1e2   : > { %v727_v49 = vsel %vm726_vm3, %v724_v47, %v721_v46 }
 0x1e3   : > { %v728_v50 = vadd.f32 %v727_v49, %v712_v48 }
 0x1e5   : > { %v729_v51 = vsel %vm713_vm4, %v709_v34, %v728_v50 }
 0x1e6   : > { %949 = vrcp.f32 %v729_v51 }
 0x1e7   : > { %951 = vlog2.f32 %v729_v51 }
 0x1f0   : > { %v950_v57 = vpop.eup %949 }
 0x1f1   : > { %v952_v58 = vpop.eup %951  ;;  %v732_v59 = vmul.f32 %v950_v57, %v731_v56 }
 0x1f2   : > { %v739_v60 = vmul.f32 0.6931472, %v952_v58 }
 0x1f3   : > { %v736_v61 = vsel %vm735_vm5, %v1054_v9, %v732_v59 }
 0x1f4   : > { %737 = vst.msk [vmem:[%s378_s19] sm:$0xff] %vm464_vm1, %v736_v61  ;;  %v740_v62 = vsel %vm735_vm5, 0.0, %v739_v60 }
 0x1f5   : > { %v741_v63 = vsel %vm464_vm1, %v740_v62, 0.0 }
 0x1f6   : > { %742 = vadd.xlane.f32.xlu0 %v741_v63 }
 0x283   : > { %v743_v0 = vpop.xlane.xlu0 %742 }
 0x284   : > { %v744_v1 = vsub.f32 0.0, %v743_v0 }
 0x286   : > { %746 = vst.msk [vmem:[%s382_s22] sm:$0xff] %vm745_vm6, %v744_v1 }
 0x287 PF: > { %s21_s13 = sadd.s32 1, %s959_s13  }
 0x288   : > { %p18_p4 = scmp.ge.s32.totalorder %s21_s13, 10  }
 0x28a   :  { %20 = sbr.rel (!%p18_p4) target bundleno = 1 (0x1), region = 101 }

</bundles_post_ra>
